<compile_context>
chip_gen: v7x
topology: tpu7x:2x2x1
jax: 0.10.0
libtpu: 0.0.40
codegen_flags: <defaults>
</compile_context>

<pallas_src>
import functools
import math
import operator

import jax
import jax.numpy as jnp
from jax.experimental import pallas as pl
from jax.experimental.pallas import tpu as pltpu


_LANE = 128
_TARGET_TILE_BYTES = 4 << 20       # ~4 MiB per tile (per in/out buffer)
_MIN_TILE_ROWS = 512               # don't split below ~256 KiB (f32) per tile
_MIN_PALLAS_ELEMENTS = 64 * 1024   # below ~256 KiB f32, XLA fused path wins


def _normalize_indices(indices, d):
    """Mirror of botorch.utils.transforms.normalize_indices."""
    if indices is None:
        return None
    normalized = []
    for i in indices:
        if i < 0:
            i = i + d
        if i < 0 or i >= d:
            raise ValueError(f"index {i} out of bounds for dimension {d}")
        normalized.append(int(i))
    return sorted(set(normalized))


# --------------------------------------------------------------------------
# Kernels
# --------------------------------------------------------------------------
def _log_all_kernel(y_ref, o_ref):
    # Compute in f32 (v5e VPU/EUP have no bf16 path), cast back on store.
    y32 = y_ref[...].astype(jnp.float32)
    o_ref[...] = jnp.log(y32).astype(o_ref.dtype)


def _make_masked_log_kernel(m, outputs):
    """Masked-log kernel for lane-dense (rows, 128) slabs of the flat array.

    The output column of element (row, lane) in grid block i is
        ((i * block_rows + row) * 128 + lane) % m
    i.e. the global flat offset modulo m. This works for ANY m (no 128 % m
    requirement) because the slab always starts at flat offset 0 of Y.
    The selection mask is a single shift/and/compare against a constant
    bitmask when m <= 31 (no OR-chain over the selected outputs).
    """
    outputs = tuple(outputs)
    bits = 0
    for idx in outputs:
        bits |= 1 << idx

    def kernel(y_ref, o_ref):
        y = y_ref[...]
        rows, lanes = y.shape  # static block shape
        i = pl.program_id(0)
        row_idx = jax.lax.broadcasted_iota(jnp.int32, y.shape, 0)
        lane_idx = jax.lax.broadcasted_iota(jnp.int32, y.shape, 1)
        # Flat offset of the block start, reduced mod m (avoids i32 overflow).
        base = (i * ((rows * lanes) % m)) % m
        col = (base + row_idx * lanes + lane_idx) % m
        if m <= 31:
            mask = (jnp.right_shift(jnp.int32(bits), col) & 1) == 1
        else:
            mask = functools.reduce(operator.or_, [col == k for k in outputs])
        y32 = y.astype(jnp.float32)
        o_ref[...] = jnp.where(mask, jnp.log(y32).astype(o_ref.dtype), y)

    return kernel


# --------------------------------------------------------------------------
# Tile sizing & launcher
# --------------------------------------------------------------------------
def _tile_config(itemsize):
    """Pick (max tile rows, vmem_limit_bytes), generation-aware."""
    try:
        vmem_cap = int(pltpu.get_tpu_info().vmem_capacity_bytes)
    except Exception:
        vmem_cap = 64 << 20  # conservative (v7x per-TC physical VMEM)
    # in + out, double-buffered ≈ 4 x tile bytes; keep the scoped budget well
    # below physical VMEM on every generation (also raises v5e's 16 MiB
    # scoped default).
    budget = min(vmem_cap // 2, 24 << 20)
    tile_bytes = min(_TARGET_TILE_BYTES, budget // 4)
    rows = max(8, (tile_bytes // (_LANE * itemsize)) // 8 * 8)
    return int(rows), int(budget)


def _tiled_elementwise_call(kernel, y2d):
    """Run an elementwise kernel over a (rows, 128) slab, tiled along rows."""
    r, c = y2d.shape
    tr_max, vmem_budget = _tile_config(y2d.dtype.itemsize)

    n_blocks = pl.cdiv(r, tr_max)
    if n_blocks < 2 and r >= 2 * _MIN_TILE_ROWS:
        # Give the "parallel" axis >= 2 steps so v7x's 2 TensorCores both work.
        n_blocks = 2
    if n_blocks <= 1:
        tr = r  # single full-extent block (legal for any r)
    else:
        tr = min(tr_max, ((pl.cdiv(r, n_blocks) + 7) // 8) * 8)
    grid = (pl.cdiv(r, tr),)  # ragged final block handled by Pallas

    return pl.pallas_call(
        kernel,
        out_shape=jax.ShapeDtypeStruct((r, c), y2d.dtype),
        grid=grid,
        in_specs=[pl.BlockSpec((tr, c), lambda i: (i, 0))],
        out_specs=pl.BlockSpec((tr, c), lambda i: (i, 0)),
        compiler_params=pltpu.CompilerParams(
            dimension_semantics=("parallel",),
            vmem_limit_bytes=vmem_budget,
        ),
    )(y2d)


# --------------------------------------------------------------------------
# XLA reference path (tiny inputs / tails)
# --------------------------------------------------------------------------
def _xla_log(Y, m, norm_outputs):
    Y_log = jnp.log(Y.astype(jnp.float32)).astype(Y.dtype)
    if norm_outputs is None:
        return Y_log
    sel = jnp.zeros((m,), dtype=bool).at[jnp.array(norm_outputs)].set(True)
    return jnp.where(sel, Y_log, Y)


# --------------------------------------------------------------------------
# Public wrapper (equivalent of Log.forward)
# --------------------------------------------------------------------------
def log_transform_forward(Y, Yvar=None, X=None, outputs=None, force_pallas=False):
    """Pallas equivalent of botorch Log.forward.

    Args:
        Y: `batch_shape x n x m` array (strictly positive targets).
        Yvar: must be None (Log does not support observation-noise transform).
        X: unused.
        outputs: optional list of output indices (last dim) to log-transform.
        force_pallas: bypass the small-input XLA fallback (testing knob).

    Returns:
        (Y_tf, Yvar) tuple.
    """
    if Yvar is not None:
        # TODO(synk): Yvar transform intentionally unsupported, as in PyTorch.
        raise NotImplementedError(
            "Log does not yet support transforming observation noise"
        )

    orig_shape = Y.shape
    m = orig_shape[-1]
    total = math.prod(orig_shape)
    norm_outputs = _normalize_indices(outputs, d=m)

    if norm_outputs is not None and len(norm_outputs) == 0:
        return Y, Yvar
    if norm_outputs is not None and len(norm_outputs) == m:
        norm_outputs = None  # all columns selected == plain log

    # Tiny inputs: XLA's fused elementwise beats pallas_call launch +
    # bookkeeping overhead.
    if total < _LANE or (not force_pallas and total < _MIN_PALLAS_ELEMENTS):
        return _xla_log(Y, m, norm_outputs), Yvar

    kernel = (
        _log_all_kernel
        if norm_outputs is None
        else _make_masked_log_kernel(m, norm_outputs)
    )

    flat = Y.reshape(-1)                 # zero-copy (row-major contiguous)
    main = (total // _LANE) * _LANE
    tail = total - main

    if tail == 0:
        y2d = flat.reshape(-1, _LANE)    # zero-copy lane-dense repack
        out2d = _tiled_elementwise_call(kernel, y2d)
        return out2d.reshape(orig_shape), Yvar

    # Ragged total: lane-aligned head via Pallas, <128-element tail via XLA.
    # (One concatenate; avoids padding + re-slicing the whole array, which
    # would add two full extra HBM passes.)
    head2d = flat[:main].reshape(-1, _LANE)
    head_out = _tiled_elementwise_call(kernel, head2d).reshape(-1)

    tail_vals = flat[main:]
    tail_log = jnp.log(tail_vals.astype(jnp.float32)).astype(Y.dtype)
    if norm_outputs is None:
        tail_out = tail_log
    else:
        col = (main + jnp.arange(tail, dtype=jnp.int32)) % m
        sel = jnp.zeros((m,), dtype=bool).at[jnp.array(norm_outputs)].set(True)
        tail_out = jnp.where(sel[col], tail_log, tail_vals)

    Y_tf = jnp.concatenate([head_out, tail_out]).reshape(orig_shape)
    return Y_tf, Yvar


# --------------------------------------------------------------------------
# Self-test
# --------------------------------------------------------------------------
if __name__ == "__main__":
    key = jax.random.PRNGKey(0)
    k1, k2, k3, k4 = jax.random.split(key, 4)

    def _subset_ref(Y, idcs):
        m = Y.shape[-1]
        cols = [
            jnp.log(Y[..., i]) if i in idcs else Y[..., i] for i in range(m)
        ]
        return jnp.stack(cols, axis=-1)

    # Case 1: lane-dense, all outputs, single block. (2, 256, 4) -> 2048 elems.
    Y1 = jax.random.uniform(k1, (2, 256, 4), jnp.float32, minval=0.1, maxval=5.0)
    out1, yvar1 = log_transform_forward(Y1, force_pallas=True)
    out1 = jax.block_until_ready(out1)
    assert yvar1 is None
    assert jnp.allclose(out1, jnp.log(Y1), atol=1e-6), "case1 mismatch"

    # Case 2: lane-dense, output subset [0, 2] (bitmask mask path).
    out2, _ = log_transform_forward(Y1, outputs=[0, 2], force_pallas=True)
    out2 = jax.block_until_ready(out2)
    assert jnp.allclose(out2, _subset_ref(Y1, (0, 2)), atol=1e-6), "case2 mismatch"

    # Case 3: medium input, multi-block "parallel" grid. (16, 1024, 8) = 131072.
    Y3 = jax.random.uniform(k2, (16, 1024, 8), jnp.float32, minval=0.1, maxval=5.0)
    out3, _ = log_transform_forward(Y3)
    out3 = jax.block_until_ready(out3)
    assert jnp.allclose(out3, jnp.log(Y3), atol=1e-6), "case3 mismatch"

    # Case 4: ragged total (head/tail) + m=5 subset with a negative index.
    Y4 = jax.random.uniform(k3, (2, 200, 5), jnp.float32, minval=0.1, maxval=5.0)
    out4, _ = log_transform_forward(Y4, outputs=[1, -1], force_pallas=True)  # cols 1, 4
    out4 = jax.block_until_ready(out4)
    assert jnp.allclose(out4, _subset_ref(Y4, (1, 4)), atol=1e-6), "case4 mismatch"

    # Case 5: bf16 input (dtype-aware tile rows, f32 compute inside kernel).
    Y5 = jax.random.uniform(
        k4, (2, 256, 4), jnp.float32, minval=0.1, maxval=5.0
    ).astype(jnp.bfloat16)
    out5, _ = log_transform_forward(Y5, force_pallas=True)
    out5 = jax.block_until_ready(out5)
    ref5 = jnp.log(Y5.astype(jnp.float32)).astype(jnp.bfloat16)
    assert jnp.allclose(
        out5.astype(jnp.float32), ref5.astype(jnp.float32), atol=2e-2, rtol=2e-2
    ), "case5 mismatch"

    # Case 6: tiny input -> XLA fallback path (semantics check only).
    Y6 = Y1[:, :8, :]
    out6, _ = log_transform_forward(Y6, outputs=[0, 2])
    out6 = jax.block_until_ready(out6)
    assert jnp.allclose(out6, _subset_ref(Y6, (0, 2)), atol=1e-6), "case6 mismatch"

    print("KERNEL_OK")
</pallas_src>

<mosaic_0001>
module attributes {stable_mosaic.version = 11 : i64} {
  func.func @_log_all_kernel(%arg0: i32, %arg1: memref<16x128xf32, #tpu.memory_space<vmem>>, %arg2: memref<16x128xf32, #tpu.memory_space<vmem>>) attributes {dimension_semantics = [#tpu.dimension_semantics<parallel>], iteration_bounds = array<i64: 1>, scalar_prefetch = 0 : i64, scratch_operands = 0 : i64, tpu.core_type = #tpu.core_type<tc>, window_params = [{transform_indices = @transform_0, window_bounds = array<i64: 16, 128>}, {transform_indices = @transform_1, window_bounds = array<i64: 16, 128>}]} {
    %c0 = arith.constant 0 : index
    %c0_0 = arith.constant 0 : index
    %0 = vector.load %arg1[%c0, %c0_0] : memref<16x128xf32, #tpu.memory_space<vmem>>, vector<16x128xf32>
    %1 = math.log %0 : vector<16x128xf32>
    %c0_1 = arith.constant 0 : index
    %c0_2 = arith.constant 0 : index
    %2 = vector.load %arg2[%c0_1, %c0_2] : memref<16x128xf32, #tpu.memory_space<vmem>>, vector<16x128xf32>
    tpu.vector_store %arg2[%c0_1, %c0_2], %1 {strides = array<i32>} : memref<16x128xf32, #tpu.memory_space<vmem>>, vector<16x128xf32>,
    return
  }
  func.func @transform_0(%arg0: i32) -> (i32, i32) {
    %c0_i32 = arith.constant 0 : i32
    %c0_i32_0 = arith.constant 0 : i32
    return %arg0, %c0_i32 : i32, i32
  }
  func.func @transform_1(%arg0: i32) -> (i32, i32) {
    %c0_i32 = arith.constant 0 : i32
    %c0_i32_0 = arith.constant 0 : i32
    return %arg0, %c0_i32 : i32, i32
  }
}

</mosaic_0001>

<bundles_post_ra>
// kernel: tpu_custom_call.1
= control target key start
LH: loop header
LB: loop body
LE: loop exit
PB: predicated region body
PF: predicated region fallthrough
CT: control target
= control target key end

     0   :  { %6 = vsyncpa [#allocation3], 0  ;;  %s148_s0 = inlined_call_operand.hbm [shape: f32[16,128], index: 0, kind: input, shape index: {}]   ;;  %s149_s1 = inlined_call_operand.hbm [shape: f32[16,128], index: 1, kind: output, shape index: {}]  }
   0x1   :  { %7 = vsyncpa [#allocation4], 0  ;;  %s104_s6 = smov [#allocation2]   ;;  %s56_s10 = scalar_lea.hbm %s148_s0, 256 }
   0x2   :  { %s13_s7 = sshll.u32 %s104_s6, 4  ;;  %p57_p0 = scmp.ne.s32.totalorder %s148_s0, %s56_s10  ;;  %s14_s7 = int_to_ptr.vmem [resolvable:$true] %s13_s7 }
   0x3   :  { %p60_p1 = scmp.lt.u32.totalorder %s56_s10, %s148_s0 }
   0x5   :  { %p62_p2 = pnand %p60_p1, %p57_p0 }
   0x7   :  { %65 = shalt.err (!%p62_p2)
}
   0x8   :  { %s66_s15 = scalar_lea.vmem %s14_s7, 256  ;;  %p71_p4 = scmp.lt.s32.totalorder %s14_s7, %s14_s7 }
   0x9   :  { %p67_p3 = scmp.ne.s32.totalorder %s14_s7, %s66_s15  ;;  %p72_p5 = scmp.lt.s32.totalorder %s66_s15, %s66_s15 }
   0xb   :  { %p73_p6 = por %p72_p5, %p71_p4 }
   0xd   :  { %p74_p7 = pnand %p73_p6, %p67_p3 }
   0xf   :  { %77 = shalt.err (!%p74_p7)
}
  0x10   :  { %s105_s16 = smov 128   ;;  %s106_s17 = smov 8  }
  0x11   :  { %19 = dma.hbm_to_vmem [thread:$0]  %s148_s0, 256, %s14_s7, [#allocation3], %s105_s16, %s105_s16, %s106_s17  }
  0x12   :  { %100 = dma.done.wait [#allocation3], 256  }
  0x13   :  { %101 = vsyncadd [#allocation3], 4294967040  ;;  %v23_v0 = vld [vmem:[#allocation2] sm:$0xff]  ;;  %v24_v1 = vld [vmem:[#allocation2 + $0x8] sm:$0xff]  ;;  %s107_s20 = smov [#allocation5]  }
  0x14   :  { %52 = vlog2.f32 %v23_v0  ;;  %s36_s21 = sshll.u32 %s107_s20, 4  ;;  %s37_s21 = int_to_ptr.vmem [resolvable:$true] %s36_s21 }
  0x15   :  { %54 = vlog2.f32 %v24_v1  ;;  %s78_s22 = scalar_lea.vmem %s37_s21, 256  ;;  %p83_p9 = scmp.lt.s32.totalorder %s37_s21, %s37_s21 }
  0x16   :  { %p79_p8 = scmp.ne.s32.totalorder %s37_s21, %s78_s22  ;;  %p84_p10 = scmp.lt.s32.totalorder %s78_s22, %s78_s22 }
  0x18   :  { %p85_p11 = por %p84_p10, %p83_p9 }
  0x1a   :  { %p86_p12 = pnand %p85_p11, %p79_p8 }
  0x1e   :  { %v53_v2 = vpop.eup %52 }
  0x1f   :  { %v55_v3 = vpop.eup %54  ;;  %v26_v4 = vmul.f32 0.6931472, %v53_v2 }
  0x20   :  { %v28_v5 = vmul.f32 0.6931472, %v55_v3 }
  0x21   :  { %29 = vst [vmem:[#allocation5] sm:$0xff] %v26_v4 }
  0x22   :  { %30 = vst [vmem:[#allocation5 + $0x8] sm:$0xff] %v28_v5 }
  0x23   :  { %89 = shalt.err (!%p86_p12)
}
  0x24   :  { %s90_s24 = scalar_lea.hbm %s149_s1, 256 }
  0x25   :  { %p91_p13 = scmp.ne.s32.totalorder %s149_s1, %s90_s24  ;;  %p94_p0 = scmp.lt.u32.totalorder %s90_s24, %s149_s1 }
  0x27   :  { %p96_p1 = pnand %p94_p0, %p91_p13 }
  0x29   :  { %99 = shalt.err (!%p96_p1)
}
  0x2a   :  { %42 = dma.vmem_to_hbm [thread:$0]  %s37_s21, 256, %s149_s1, [#allocation4], %s105_s16, %s105_s16, %s106_s17  }
  0x2b   :  { %102 = dma.done.wait [#allocation4], 256  }
  0x2c   :  { %103 = vsyncadd [#allocation4], 4294967040 }
  0x2d   :  { %46 = vsyncpa [#allocation3], 1 }
  0x2e   :  { %47 = vsyncpa [#allocation4], 1 }

</bundles_post_ra>
